<compile_context>
chip_gen: v6e
topology: v6e:2x2x1
jax: 0.10.0
libtpu: 0.0.40
codegen_flags: <defaults>
</compile_context>

<pallas_src>
import jax
import jax.numpy as jnp
from jax import lax
from jax.experimental import pallas as pl
from jax.experimental.pallas import tpu as pltpu


def _round_up(x, m):
    return ((x + m - 1) // m) * m


def _semid_packed_kernel(ids_ref, table_ref, out_ref):
    # ids_ref:   (rows, G)       int32  -- G consecutive tokens' sem_ids per row
    # table_ref: (G*V_pad, G*D)  block-diagonal packed embedding table
    # out_ref:   (rows, G*D)     lane-dense packed output (G tokens per row)
    rows, g = ids_ref.shape
    v_pad = table_ref.shape[0] // g

    ids = ids_ref[...]                                         # (rows, G)
    col = lax.broadcasted_iota(jnp.int32, (rows, v_pad), 1)    # shared iota
    # One (rows, V_pad) compare per slot; pieces are 128-lane aligned so the
    # concat along lanes is pure vreg placement (no cross-lane movement).
    pieces = [(col == ids[:, s:s + 1]).astype(table_ref.dtype) for s in range(g)]
    onehot = pieces[0] if g == 1 else jnp.concatenate(pieces, axis=1)

    # MXU gather: (rows, G*V_pad) @ (G*V_pad, G*D) -> (rows, G*D) lane-dense.
    out_ref[...] = jnp.dot(
        onehot, table_ref[...], preferred_element_type=jnp.float32
    ).astype(out_ref.dtype)


def pack_table(table, *, row_multiple=128, lane_width=128):
    """Pad + block-diagonal-pack the embedding table ONCE at init.

    Pads the vocab axis to `row_multiple` (128 is MXU-native K on v5e and fine
    on v6e/v7x; pass 256 to prefer the wider K on v6e+).  When D divides the
    128-lane width, the padded table is replicated onto the diagonal of a
    (G*V_pad, G*D) matrix with G = 128 // D so the kernel emits lane-dense
    128-wide output rows (G tokens per row).

    Returns (packed_table, (G, V_pad, D)).
    """
    v, d = table.shape
    v_pad = _round_up(v, row_multiple)
    tp = jnp.pad(table, ((0, v_pad - v), (0, 0)))
    g = lane_width // d if (d < lane_width and lane_width % d == 0) else 1
    if g == 1:
        return tp, (1, v_pad, d)
    packed = jnp.zeros((g * v_pad, g * d), table.dtype)
    for s in range(g):
        packed = packed.at[s * v_pad:(s + 1) * v_pad, s * d:(s + 1) * d].set(tp)
    return packed, (g, v_pad, d)


def sem_id_embedding(input_ids, token_type_ids, packed_table, packed_meta, *,
                     num_embeddings, pad_id=0, tile=512,
                     vmem_limit_bytes=None, single_buffer_table=True):
    """input_ids, token_type_ids: (B, T) int; (packed_table, packed_meta) from
    pack_table().  Returns (B, T, D), matching SemIdEmbedding.forward.

    Note: out-of-range sem_ids are silently mapped to zero rows (torch would
    raise); inputs are assumed valid.
    """
    B, T = input_ids.shape
    g, v_pad, d = packed_meta
    dtype = packed_table.dtype
    N = B * T

    # Fused id arithmetic in the wrapper: one int32 stream into the kernel.
    sem_ids = (token_type_ids.astype(jnp.int32) * num_embeddings
               + input_ids.astype(jnp.int32)).reshape(-1)

    # Tile granularity: sublane multiple (8 f32 / 16 bf16 / 32 int8) x G tokens
    # per packed row.  Clamp for tiny N, round any user tile up to granularity.
    sub = {4: 8, 2: 16, 1: 32}.get(jnp.dtype(dtype).itemsize, 8)
    gran = sub * g
    tile = max(gran, min(int(tile), _round_up(N, gran)))
    tile = _round_up(tile, gran)
    n_pad = _round_up(N, tile)

    # Pad with pad_id (padding_idx is self-documenting); padded rows are
    # sliced off after the call anyway.
    ids2d = jnp.pad(sem_ids, (0, n_pad - N),
                    constant_values=pad_id).reshape(n_pad // g, g)

    n_rows = n_pad // g
    rows_per_block = tile // g
    grid = (n_pad // tile,)

    def build(single_buffer):
        tbl_kwargs = {}
        if single_buffer and hasattr(pl, "Buffered"):
            # Grid-invariant table: DMA'd once; single-buffer to halve its VMEM.
            tbl_kwargs["pipeline_mode"] = pl.Buffered(1)
        cp = dict(dimension_semantics=("parallel",))
        if vmem_limit_bytes is not None:
            cp["vmem_limit_bytes"] = vmem_limit_bytes
        return pl.pallas_call(
            _semid_packed_kernel,
            out_shape=jax.ShapeDtypeStruct((n_rows, g * d), dtype),
            grid_spec=pltpu.PrefetchScalarGridSpec(
                num_scalar_prefetch=0,
                grid=grid,
                in_specs=[
                    pl.BlockSpec((rows_per_block, g), lambda i: (i, 0)),
                    pl.BlockSpec((g * v_pad, g * d), lambda i: (0, 0),
                                 **tbl_kwargs),
                ],
                out_specs=pl.BlockSpec((rows_per_block, g * d),
                                       lambda i: (i, 0)),
            ),
            compiler_params=pltpu.CompilerParams(**cp),
        )

    try:
        out_packed = build(single_buffer_table)(ids2d, packed_table)
    except Exception:
        if not single_buffer_table:
            raise
        # Fallback if this JAX/Mosaic build rejects single-buffered pipelining.
        out_packed = build(False)(ids2d, packed_table)

    # (n_rows, G*D) -> (n_pad, D) is a free row-major view; slice off padding.
    return out_packed.reshape(n_pad, d)[:N].reshape(B, T, d)


if __name__ == "__main__":
    # Module config (small, consistent with the forward pass).
    num_embeddings = 30
    sem_ids_dim = 4
    embeddings_dim = 32
    vocab = num_embeddings * sem_ids_dim + 1            # 121
    padding_idx = sem_ids_dim * num_embeddings          # 120

    key = jax.random.PRNGKey(0)
    k_tab, k_ids, k_ids2 = jax.random.split(key, 3)

    # Deterministic parameter init (nn.Embedding ~ N(0,1), padding row zeroed).
    table = jax.random.normal(k_tab, (vocab, embeddings_dim), jnp.float32)
    table = table.at[padding_idx].set(0.0)

    # Hoisted one-time packing: V_pad=128, G=4 -> packed table (512, 128).
    packed_table, packed_meta = pack_table(table)

    # ---- Primary small-shape run (B=2, T=8) ----
    B, T = 2, 8
    input_ids = jax.random.randint(k_ids, (B, T), 0, num_embeddings, jnp.int32)
    token_type_ids = jnp.tile(jnp.arange(sem_ids_dim, dtype=jnp.int32),
                              T // sem_ids_dim)[None, :].repeat(B, axis=0)
    # Make one position hit the padding row (token_type = C, id = 0 -> padding_idx).
    input_ids = input_ids.at[0, 3].set(0)
    token_type_ids = token_type_ids.at[0, 3].set(sem_ids_dim)

    out = sem_id_embedding(input_ids, token_type_ids, packed_table, packed_meta,
                           num_embeddings=num_embeddings, pad_id=padding_idx)
    out = jax.block_until_ready(out)

    sem_ids = token_type_ids * num_embeddings + input_ids
    ref = table[sem_ids]
    assert out.shape == (B, T, embeddings_dim)
    assert jnp.allclose(out, ref, atol=1e-5), "mismatch vs reference (small)"
    assert jnp.all(out[0, 3] == 0.0), "padding row not zero"

    # ---- Secondary check: full 512-token tile, multi-step grid, padded tail ----
    B2, T2 = 2, 640                                      # N=1280 -> tile=512, grid=(3,)
    input_ids2 = jax.random.randint(k_ids2, (B2, T2), 0, num_embeddings, jnp.int32)
    token_type_ids2 = jnp.tile(jnp.arange(sem_ids_dim, dtype=jnp.int32),
                               T2 // sem_ids_dim)[None, :].repeat(B2, axis=0)
    out2 = jax.block_until_ready(
        sem_id_embedding(input_ids2, token_type_ids2, packed_table, packed_meta,
                         num_embeddings=num_embeddings, pad_id=padding_idx))
    ref2 = table[token_type_ids2 * num_embeddings + input_ids2]
    assert jnp.allclose(out2, ref2, atol=1e-5), "mismatch vs reference (tiled)"

    print("KERNEL_OK")
</pallas_src>

<mosaic_0001>
module attributes {stable_mosaic.version = 11 : i64} {
  func.func @_semid_packed_kernel(%arg0: i32, %arg1: memref<8x4xi32, #tpu.memory_space<vmem>>, %arg2: memref<512x128xf32, #tpu.memory_space<vmem>>, %arg3: memref<8x128xf32, #tpu.memory_space<vmem>>) attributes {dimension_semantics = [#tpu.dimension_semantics<parallel>], iteration_bounds = array<i64: 1>, scalar_prefetch = 0 : i64, scratch_operands = 0 : i64, tpu.core_type = #tpu.core_type<tc>, window_params = [{transform_indices = @transform_0, window_bounds = array<i64: 8, 4>}, {pipeline_mode = #tpu.pipeline_mode<synchronous>, transform_indices = @transform_1, window_bounds = array<i64: 512, 128>}, {transform_indices = @transform_2, window_bounds = array<i64: 8, 128>}]} {
    %c0 = arith.constant 0 : index
    %c0_0 = arith.constant 0 : index
    %0 = vector.load %arg1[%c0, %c0_0] : memref<8x4xi32, #tpu.memory_space<vmem>>, vector<8x4xi32>
    %1 = tpu.iota {dimensions = array<i32: 1>} : vector<8x128xi32>
    %2 = vector.extract_strided_slice %0 {offsets = [0, 0], sizes = [8, 1], strides = [1, 1]} : vector<8x4xi32> to vector<8x1xi32>
    %3 = vector.broadcast %2 : vector<8x1xi32> to vector<8x128xi32>
    %4 = arith.cmpi eq, %1, %3 : vector<8x128xi32>
    %5 = arith.extui %4 : vector<8x128xi1> to vector<8x128xi32>
    %6 = arith.sitofp %5 : vector<8x128xi32> to vector<8x128xf32>
    %7 = vector.extract_strided_slice %0 {offsets = [0, 1], sizes = [8, 1], strides = [1, 1]} : vector<8x4xi32> to vector<8x1xi32>
    %8 = vector.broadcast %7 : vector<8x1xi32> to vector<8x128xi32>
    %9 = arith.cmpi eq, %1, %8 : vector<8x128xi32>
    %10 = arith.extui %9 : vector<8x128xi1> to vector<8x128xi32>
    %11 = arith.sitofp %10 : vector<8x128xi32> to vector<8x128xf32>
    %12 = vector.extract_strided_slice %0 {offsets = [0, 2], sizes = [8, 1], strides = [1, 1]} : vector<8x4xi32> to vector<8x1xi32>
    %13 = vector.broadcast %12 : vector<8x1xi32> to vector<8x128xi32>
    %14 = arith.cmpi eq, %1, %13 : vector<8x128xi32>
    %15 = arith.extui %14 : vector<8x128xi1> to vector<8x128xi32>
    %16 = arith.sitofp %15 : vector<8x128xi32> to vector<8x128xf32>
    %17 = vector.extract_strided_slice %0 {offsets = [0, 3], sizes = [8, 1], strides = [1, 1]} : vector<8x4xi32> to vector<8x1xi32>
    %18 = vector.broadcast %17 : vector<8x1xi32> to vector<8x128xi32>
    %19 = arith.cmpi eq, %1, %18 : vector<8x128xi32>
    %20 = arith.extui %19 : vector<8x128xi1> to vector<8x128xi32>
    %21 = arith.sitofp %20 : vector<8x128xi32> to vector<8x128xf32>
    %22 = tpu.concatenate %6, %11, %16, %21 in 1 : vector<8x128xf32>, vector<8x128xf32>, vector<8x128xf32>, vector<8x128xf32> -> vector<8x512xf32>
    %c0_1 = arith.constant 0 : index
    %c0_2 = arith.constant 0 : index
    %23 = vector.load %arg2[%c0_1, %c0_2] : memref<512x128xf32, #tpu.memory_space<vmem>>, vector<512x128xf32>
    %cst = arith.constant dense<0.000000e+00> : vector<8x128xf32>
    %24 = tpu.matmul %22, %23, %cst {dimension_numbers = #tpu.dot_dimension_numbers<[1], [0], [0], [1], [0, 0, 1, 1], [], []>} : vector<8x512xf32>, vector<512x128xf32>, vector<8x128xf32> -> vector<8x128xf32>
    %c0_3 = arith.constant 0 : index
    %c0_4 = arith.constant 0 : index
    %25 = vector.load %arg3[%c0_3, %c0_4] : memref<8x128xf32, #tpu.memory_space<vmem>>, vector<8x128xf32>
    tpu.vector_store %arg3[%c0_3, %c0_4], %24 {strides = array<i32>} : memref<8x128xf32, #tpu.memory_space<vmem>>, vector<8x128xf32>,
    return
  }
  func.func @transform_0(%arg0: i32) -> (i32, i32) {
    %c0_i32 = arith.constant 0 : i32
    %c0_i32_0 = arith.constant 0 : i32
    return %arg0, %c0_i32 : i32, i32
  }
  func.func @transform_1(%arg0: i32) -> (i32, i32) {
    %c0_i32 = arith.constant 0 : i32
    %c0_i32_0 = arith.constant 0 : i32
    %c0_i32_1 = arith.constant 0 : i32
    return %c0_i32, %c0_i32_0 : i32, i32
  }
  func.func @transform_2(%arg0: i32) -> (i32, i32) {
    %c0_i32 = arith.constant 0 : i32
    %c0_i32_0 = arith.constant 0 : i32
    return %arg0, %c0_i32 : i32, i32
  }
}

module attributes {stable_mosaic.version = 11 : i64} {
  func.func @_semid_packed_kernel(%arg0: i32, %arg1: memref<8x4xi32, #tpu.memory_space<vmem>>, %arg2: memref<512x128xf32, #tpu.memory_space<vmem>>, %arg3: memref<8x128xf32, #tpu.memory_space<vmem>>) attributes {dimension_semantics = [#tpu.dimension_semantics<parallel>], iteration_bounds = array<i64: 1>, scalar_prefetch = 0 : i64, scratch_operands = 0 : i64, tpu.core_type = #tpu.core_type<tc>, window_params = [{transform_indices = @transform_0, window_bounds = array<i64: 8, 4>}, {pipeline_mode = #tpu.pipeline_mode<synchronous>, transform_indices = @transform_1, window_bounds = array<i64: 512, 128>}, {transform_indices = @transform_2, window_bounds = array<i64: 8, 128>}]} {
    %c0 = arith.constant 0 : index
    %c0_0 = arith.constant 0 : index
    %0 = vector.load %arg1[%c0, %c0_0] : memref<8x4xi32, #tpu.memory_space<vmem>>, vector<8x4xi32>
    %1 = tpu.iota {dimensions = array<i32: 1>} : vector<8x128xi32>
    %2 = vector.extract_strided_slice %0 {offsets = [0, 0], sizes = [8, 1], strides = [1, 1]} : vector<8x4xi32> to vector<8x1xi32>
    %3 = vector.broadcast %2 : vector<8x1xi32> to vector<8x128xi32>
    %4 = arith.cmpi eq, %1, %3 : vector<8x128xi32>
    %5 = arith.extui %4 : vector<8x128xi1> to vector<8x128xi32>
    %6 = arith.sitofp %5 : vector<8x128xi32> to vector<8x128xf32>
    %7 = vector.extract_strided_slice %0 {offsets = [0, 1], sizes = [8, 1], strides = [1, 1]} : vector<8x4xi32> to vector<8x1xi32>
    %8 = vector.broadcast %7 : vector<8x1xi32> to vector<8x128xi32>
    %9 = arith.cmpi eq, %1, %8 : vector<8x128xi32>
    %10 = arith.extui %9 : vector<8x128xi1> to vector<8x128xi32>
    %11 = arith.sitofp %10 : vector<8x128xi32> to vector<8x128xf32>
    %12 = vector.extract_strided_slice %0 {offsets = [0, 2], sizes = [8, 1], strides = [1, 1]} : vector<8x4xi32> to vector<8x1xi32>
    %13 = vector.broadcast %12 : vector<8x1xi32> to vector<8x128xi32>
    %14 = arith.cmpi eq, %1, %13 : vector<8x128xi32>
    %15 = arith.extui %14 : vector<8x128xi1> to vector<8x128xi32>
    %16 = arith.sitofp %15 : vector<8x128xi32> to vector<8x128xf32>
    %17 = vector.extract_strided_slice %0 {offsets = [0, 3], sizes = [8, 1], strides = [1, 1]} : vector<8x4xi32> to vector<8x1xi32>
    %18 = vector.broadcast %17 : vector<8x1xi32> to vector<8x128xi32>
    %19 = arith.cmpi eq, %1, %18 : vector<8x128xi32>
    %20 = arith.extui %19 : vector<8x128xi1> to vector<8x128xi32>
    %21 = arith.sitofp %20 : vector<8x128xi32> to vector<8x128xf32>
    %22 = tpu.concatenate %6, %11, %16, %21 in 1 : vector<8x128xf32>, vector<8x128xf32>, vector<8x128xf32>, vector<8x128xf32> -> vector<8x512xf32>
    %c0_1 = arith.constant 0 : index
    %c0_2 = arith.constant 0 : index
    %23 = vector.load %arg2[%c0_1, %c0_2] : memref<512x128xf32, #tpu.memory_space<vmem>>, vector<512x128xf32>
    %cst = arith.constant dense<0.000000e+00> : vector<8x128xf32>
    %24 = tpu.matmul %22, %23, %cst {dimension_numbers = #tpu.dot_dimension_numbers<[1], [0], [0], [1], [0, 0, 1, 1], [], []>} : vector<8x512xf32>, vector<512x128xf32>, vector<8x128xf32> -> vector<8x128xf32>
    %c0_3 = arith.constant 0 : index
    %c0_4 = arith.constant 0 : index
    %25 = vector.load %arg3[%c0_3, %c0_4] : memref<8x128xf32, #tpu.memory_space<vmem>>, vector<8x128xf32>
    tpu.vector_store %arg3[%c0_3, %c0_4], %24 {strides = array<i32>} : memref<8x128xf32, #tpu.memory_space<vmem>>, vector<8x128xf32>,
    return
  }
  func.func @transform_0(%arg0: i32) -> (i32, i32) {
    %c0_i32 = arith.constant 0 : i32
    %c0_i32_0 = arith.constant 0 : i32
    return %arg0, %c0_i32 : i32, i32
  }
  func.func @transform_1(%arg0: i32) -> (i32, i32) {
    %c0_i32 = arith.constant 0 : i32
    %c0_i32_0 = arith.constant 0 : i32
    %c0_i32_1 = arith.constant 0 : i32
    return %c0_i32, %c0_i32_0 : i32, i32
  }
  func.func @transform_2(%arg0: i32) -> (i32, i32) {
    %c0_i32 = arith.constant 0 : i32
    %c0_i32_0 = arith.constant 0 : i32
    return %arg0, %c0_i32 : i32, i32
  }
}

</mosaic_0001>

<bundles_post_ra>
// kernel: tpu_custom_call.1
= control target key start
LH: loop header
LB: loop body
LE: loop exit
PB: predicated region body
PF: predicated region fallthrough
CT: control target
= control target key end

     0   :  { %7 = vsyncpa [#allocation3], 0  ;;  %s441_s0 = inlined_call_operand.vmem [shape: s32[8,4], index: 0, kind: input, shape index: {}]   ;;  %s442_s1 = inlined_call_operand.hbm [shape: f32[512,128], index: 1, kind: input, shape index: {}]   ;;  %s443_s2 = inlined_call_operand.hbm [shape: f32[8,128], index: 2, kind: output, shape index: {}]  }
   0x1   :  { %8 = vsyncpa [#allocation4], 0  ;;  %s408_s9 = smov [#allocation2]  }
   0x2   :  { %s16_s10 = sshll.u32 %s408_s9, 4  ;;  %s17_s10 = int_to_ptr.vmem [resolvable:$true] %s16_s10 }
   0x3   :  { %s372_s11 = scalar_lea.vmem %s17_s10, 8192  ;;  %p377_p1 = scmp.lt.s32.totalorder %s17_s10, %s17_s10 }
   0x4   :  { %p373_p0 = scmp.ne.s32.totalorder %s17_s10, %s372_s11  ;;  %p378_p2 = scmp.lt.s32.totalorder %s372_s11, %s372_s11 }
   0x6   :  { %p379_p3 = por %p378_p2, %p377_p1 }
   0x8   :  { %p380_p4 = pnand %p379_p3, %p373_p0 }
   0xa   :  { %383 = shalt.err (!%p380_p4)
}
   0xb   :  { %s409_s12 = smov 128   ;;  %s410_s13 = smov 8  }
   0xc   :  { %22 = dma.hbm_to_vmem [thread:$0]  %s442_s1, 8192, %s17_s10, [#allocation3], %s409_s12, %s409_s12, %s410_s13  }
   0xd   :  { %404 = dma.done.wait [#allocation3], 8192  }
   0xe   :  { %405 = vsyncadd [#allocation3], 4294959104  ;;  %v411_v0 = vmov 1   ;;  %v412_v1 = vmov 0   ;;  %v26_v2 = vld [vmem:[%s441_s0] sm:$0xff]  ;;  %v84_v3 = vld [vmem:[#allocation2 + $0xf8] sm:$0xff] }
   0xf   :  { %360 = vset.pattern.permute.xlu0 %v411_v0  ;;  %362 = vset.pattern.permute.xlu1 %v412_v1  ;;  %v68_v4 = vld [vmem:[#allocation2 + $0x78] sm:$0xff]  ;;  %v83_v5 = vld [vmem:[#allocation2 + $0xf0] sm:$0xff]  ;;  %v413_v10 = vmov 3   ;;  %v414_v11 = vmov 2   ;;  %v82_v12 = vld [vmem:[#allocation2 + $0xe8] sm:$0xff]  ;;  %s416_s0 = smov [#allocation5]  }
  0x10   :  { %36 = vperm.xlu0 %360, %v26_v2   ;;  %30 = vperm.xlu1 %362, %v26_v2   ;;  %v116_v6 = vld [vmem:[#allocation2 + $0x1f8] sm:$0xff]  ;;  %v67_v8 = vld [vmem:[#allocation2 + $0x70] sm:$0xff]  ;;  %v66_v14 = vld [vmem:[#allocation2 + $0x68] sm:$0xff]  ;;  %s264_s1 = sshll.u32 %s416_s0, 4  ;;  %s265_s1 = int_to_ptr.vmem [resolvable:$true] %s264_s1 }
  0x11   :  { %281 = vmatprep.subr.mxu0 %v84_v3  ;;  %316 = vmatprep.subr.mxu1 %v116_v6  ;;  %v100_v7 = vld [vmem:[#allocation2 + $0x178] sm:$0xff]  ;;  %v115_v9 = vld [vmem:[#allocation2 + $0x1f0] sm:$0xff]  ;;  %v114_v15 = vld [vmem:[#allocation2 + $0x1e8] sm:$0xff]  ;;  %s384_s18 = scalar_lea.vmem %s265_s1, 128  ;;  %p389_p6 = scmp.lt.s32.totalorder %s265_s1, %s265_s1 }
  0x12   :  { %282 = vmatpush3.msra.mxu0 %v68_v4  ;;  %317 = vmatpush3.msra.mxu1 %v100_v7  ;;  %v99_v13 = vld [vmem:[#allocation2 + $0x170] sm:$0xff]  ;;  %v81_v16 = vld [vmem:[#allocation2 + $0xe0] sm:$0xff]  ;;  %v98_v17 = vld [vmem:[#allocation2 + $0x168] sm:$0xff]  ;;  %p385_p5 = scmp.ne.s32.totalorder %s265_s1, %s384_s18  ;;  %p390_p7 = scmp.lt.s32.totalorder %s384_s18, %s384_s18 }
  0x13   :  { %283 = vmatprep.subr.mxu0 %v83_v5  ;;  %318 = vmatprep.subr.mxu1 %v115_v9  ;;  %v65_v18 = vld [vmem:[#allocation2 + $0x60] sm:$0xff]  ;;  %v80_v20 = vld [vmem:[#allocation2 + $0xd8] sm:$0xff]  ;;  %v79_v24 = vld [vmem:[#allocation2 + $0xd0] sm:$0xff]  ;;  %v27_v5 = vlaneseq  ;;  %v415_v9 = vmov 1.0  }
  0x14   :  { %361 = vset.pattern.permute.xlu0 %v413_v10  ;;  %363 = vset.pattern.permute.xlu1 %v414_v11  ;;  %v113_v19 = vld [vmem:[#allocation2 + $0x1e0] sm:$0xff]  ;;  %v64_v22 = vld [vmem:[#allocation2 + $0x58] sm:$0xff]  ;;  %v63_v26 = vld [vmem:[#allocation2 + $0x50] sm:$0xff]  ;;  %p391_p8 = por %p390_p7, %p389_p6 }
  0x15   :  { %48 = vperm.xlu0 %361, %v26_v2   ;;  %42 = vperm.xlu1 %363, %v26_v2   ;;  %v97_v21 = vld [vmem:[#allocation2 + $0x160] sm:$0xff]  ;;  %v112_v23 = vld [vmem:[#allocation2 + $0x1d8] sm:$0xff]  ;;  %v111_v27 = vld [vmem:[#allocation2 + $0x1d0] sm:$0xff]  ;;  %v28_v6 = vand.u32 127, %v27_v5 }
  0x16   :  { %284 = vmatpush3.msra.mxu0 %v67_v8  ;;  %319 = vmatpush3.msra.mxu1 %v99_v13  ;;  %v96_v25 = vld [vmem:[#allocation2 + $0x158] sm:$0xff]  ;;  %v78_v28 = vld [vmem:[#allocation2 + $0xc8] sm:$0xff]  ;;  %v95_v29 = vld [vmem:[#allocation2 + $0x150] sm:$0xff]  ;;  %p392_p9 = pnand %p391_p8, %p385_p5 }
  0x17   :  { %285 = vmatprep.subr.mxu0 %v82_v12  ;;  %320 = vmatprep.subr.mxu1 %v114_v15  ;;  %v62_v30 = vld [vmem:[#allocation2 + $0x48] sm:$0xff]  ;;  %v77_v32 = vld [vmem:[#allocation2 + $0xc0] sm:$0xff]  ;;  %v76_v36 = vld [vmem:[#allocation2 + $0xb8] sm:$0xff] }
  0x18   :  { %286 = vmatpush3.msra.mxu0 %v66_v14  ;;  %321 = vmatpush3.msra.mxu1 %v98_v17  ;;  %v110_v31 = vld [vmem:[#allocation2 + $0x1c8] sm:$0xff]  ;;  %v61_v34 = vld [vmem:[#allocation2 + $0x40] sm:$0xff]  ;;  %v60_v38 = vld [vmem:[#allocation2 + $0x38] sm:$0xff] }
  0x19   :  { %287 = vmatprep.subr.mxu0 %v81_v16  ;;  %322 = vmatprep.subr.mxu1 %v113_v19  ;;  %v94_v33 = vld [vmem:[#allocation2 + $0x148] sm:$0xff]  ;;  %v109_v35 = vld [vmem:[#allocation2 + $0x1c0] sm:$0xff]  ;;  %v108_v39 = vld [vmem:[#allocation2 + $0x1b8] sm:$0xff] }
  0x1a   :  { %288 = vmatpush3.msra.mxu0 %v65_v18  ;;  %323 = vmatpush3.msra.mxu1 %v97_v21  ;;  %v93_v37 = vld [vmem:[#allocation2 + $0x140] sm:$0xff]  ;;  %v75_v40 = vld [vmem:[#allocation2 + $0xb0] sm:$0xff]  ;;  %v92_v41 = vld [vmem:[#allocation2 + $0x138] sm:$0xff] }
  0x1b   :  { %289 = vmatprep.subr.mxu0 %v80_v20  ;;  %324 = vmatprep.subr.mxu1 %v112_v23  ;;  %v59_v42 = vld [vmem:[#allocation2 + $0x30] sm:$0xff]  ;;  %v74_v44 = vld [vmem:[#allocation2 + $0xa8] sm:$0xff]  ;;  %v73_v48 = vld [vmem:[#allocation2 + $0xa0] sm:$0xff] }
  0x1c   :  { %290 = vmatpush3.msra.mxu0 %v64_v22  ;;  %325 = vmatpush3.msra.mxu1 %v96_v25  ;;  %v107_v43 = vld [vmem:[#allocation2 + $0x1b0] sm:$0xff]  ;;  %v58_v46 = vld [vmem:[#allocation2 + $0x28] sm:$0xff]  ;;  %v57_v50 = vld [vmem:[#allocation2 + $0x20] sm:$0xff] }
  0x1d   :  { %291 = vmatprep.subr.mxu0 %v79_v24  ;;  %326 = vmatprep.subr.mxu1 %v111_v27  ;;  %v91_v45 = vld [vmem:[#allocation2 + $0x130] sm:$0xff]  ;;  %v106_v47 = vld [vmem:[#allocation2 + $0x1a8] sm:$0xff]  ;;  %v105_v51 = vld [vmem:[#allocation2 + $0x1a0] sm:$0xff] }
  0x1e   :  { %292 = vmatpush3.msra.mxu0 %v63_v26  ;;  %327 = vmatpush3.msra.mxu1 %v95_v29  ;;  %v90_v49 = vld [vmem:[#allocation2 + $0x128] sm:$0xff]  ;;  %v72_v52 = vld [vmem:[#allocation2 + $0x98] sm:$0xff]  ;;  %v89_v53 = vld [vmem:[#allocation2 + $0x120] sm:$0xff] }
  0x1f   :  { %293 = vmatprep.subr.mxu0 %v78_v28  ;;  %328 = vmatprep.subr.mxu1 %v110_v31  ;;  %v56_v54 = vld [vmem:[#allocation2 + $0x18] sm:$0xff]  ;;  %v71_v56 = vld [vmem:[#allocation2 + $0x90] sm:$0xff]  ;;  %v70_v60 = vld [vmem:[#allocation2 + $0x88] sm:$0xff] }
  0x20   :  { %294 = vmatpush3.msra.mxu0 %v62_v30  ;;  %329 = vmatpush3.msra.mxu1 %v94_v33  ;;  %v104_v55 = vld [vmem:[#allocation2 + $0x198] sm:$0xff]  ;;  %v55_v58 = vld [vmem:[#allocation2 + $0x10] sm:$0xff]  ;;  %v54_v62 = vld [vmem:[#allocation2 + $0x8] sm:$0xff] }
  0x21   :  { %295 = vmatprep.subr.mxu0 %v77_v32  ;;  %330 = vmatprep.subr.mxu1 %v109_v35  ;;  %v88_v57 = vld [vmem:[#allocation2 + $0x118] sm:$0xff]  ;;  %v103_v59 = vld [vmem:[#allocation2 + $0x190] sm:$0xff]  ;;  %v102_v63 = vld [vmem:[#allocation2 + $0x188] sm:$0xff] }
  0x22   :  { %296 = vmatpush3.msra.mxu0 %v61_v34  ;;  %331 = vmatpush3.msra.mxu1 %v93_v37  ;;  %v87_v61 = vld [vmem:[#allocation2 + $0x110] sm:$0xff]  ;;  %v69_v0 = vld [vmem:[#allocation2 + $0x80] sm:$0xff]  ;;  %v86_v1 = vld [vmem:[#allocation2 + $0x108] sm:$0xff] }
  0x23   :  { %297 = vmatprep.subr.mxu0 %v76_v36  ;;  %332 = vmatprep.subr.mxu1 %v108_v39  ;;  %v53_v2 = vld [vmem:[#allocation2] sm:$0xff] }
  0x24   :  { %298 = vmatpush3.msra.mxu0 %v60_v38  ;;  %333 = vmatpush3.msra.mxu1 %v92_v41  ;;  %v101_v3 = vld [vmem:[#allocation2 + $0x180] sm:$0xff] }
  0x25   :  { %299 = vmatprep.subr.mxu0 %v75_v40  ;;  %334 = vmatprep.subr.mxu1 %v107_v43  ;;  %v85_v4 = vld [vmem:[#allocation2 + $0x100] sm:$0xff] }
  0x26   :  { %300 = vmatpush3.msra.mxu0 %v59_v42  ;;  %335 = vmatpush3.msra.mxu1 %v91_v45 }
  0x27   :  { %301 = vmatprep.subr.mxu0 %v74_v44  ;;  %336 = vmatprep.subr.mxu1 %v106_v47 }
  0x28   :  { %302 = vmatpush3.msra.mxu0 %v58_v46  ;;  %337 = vmatpush3.msra.mxu1 %v90_v49 }
  0x29   :  { %303 = vmatprep.subr.mxu0 %v73_v48  ;;  %338 = vmatprep.subr.mxu1 %v105_v51 }
  0x2a   :  { %304 = vmatpush3.msra.mxu0 %v57_v50  ;;  %339 = vmatpush3.msra.mxu1 %v89_v53 }
  0x2b   :  { %305 = vmatprep.subr.mxu0 %v72_v52  ;;  %340 = vmatprep.subr.mxu1 %v104_v55 }
  0x2c   :  { %306 = vmatpush3.msra.mxu0 %v56_v54  ;;  %341 = vmatpush3.msra.mxu1 %v88_v57 }
  0x2d   :  { %307 = vmatprep.subr.mxu0 %v71_v56  ;;  %342 = vmatprep.subr.mxu1 %v103_v59 }
  0x2e   :  { %308 = vmatpush3.msra.mxu0 %v55_v58  ;;  %343 = vmatpush3.msra.mxu1 %v87_v61 }
  0x2f   :  { %309 = vmatprep.subr.mxu0 %v70_v60  ;;  %344 = vmatprep.subr.mxu1 %v102_v63 }
  0x30   :  { %310 = vmatpush3.msra.mxu0 %v54_v62  ;;  %345 = vmatpush3.msra.mxu1 %v86_v1 }
  0x31   :  { %311 = vmatprep.subr.mxu0 %v69_v0  ;;  %346 = vmatprep.subr.mxu1 %v101_v3 }
  0x32   :  { %312 = vmatpush3.msra.mxu0 %v53_v2  ;;  %347 = vmatpush3.msra.mxu1 %v85_v4 }
  0x8b   :  { %v37_v7 = vpop.permute.xlu0 %36  ;;  %v31_v8 = vpop.permute.xlu1 %30 }
  0x8c   :  { %vm32_vm0 = vcmp.eq.s32.totalorder %v28_v6, %v31_v8  ;;  %vm38_vm1 = vcmp.eq.s32.totalorder %v28_v6, %v37_v7 }
  0x8d   :  { %277 = vmatprep.mubr.msk.f32.mxu0 %vm38_vm1, %v415_v9 }
  0x8e   :  { %278 = vmatmul.mubr.msk.f32.vlgmr.msra.gmra.mxu0 %vm32_vm0, %v415_v9 }
  0x90   :  { %v49_v10 = vpop.permute.xlu0 %48  ;;  %v43_v11 = vpop.permute.xlu1 %42 }
  0x91   :  { %vm44_vm2 = vcmp.eq.s32.totalorder %v28_v6, %v43_v11  ;;  %vm50_vm3 = vcmp.eq.s32.totalorder %v28_v6, %v49_v10 }
  0x92   :  { %279 = vmatprep.mubr.msk.f32.mxu1 %vm50_vm3, %v415_v9 }
  0x93   :  { %280 = vmatmul.mubr.msk.f32.vlgmr.msra.gmra.mxu1 %vm44_vm2, %v415_v9 }
 0x14e   :  { %v313_v12 = vpop.f32.mrf.mxu0 }
 0x150   :  { %v314_v13 = vpop.f32.mrf.mxu0 }
 0x151   :  { %v315_v16 = vadd.f32 %v314_v13, %v313_v12 }
 0x153   :  { %v348_v14 = vpop.f32.mrf.mxu1 }
 0x155   :  { %v349_v15 = vpop.f32.mrf.mxu1 }
 0x156   :  { %v350_v17 = vadd.f32 %v349_v15, %v348_v14 }
 0x158   :  { %v254_v18 = vadd.f32 %v350_v17, %v315_v16 }
 0x15a   :  { %257 = vst [vmem:[#allocation5] sm:$0xff] %v254_v18 }
 0x15b   :  { %395 = shalt.err (!%p392_p9)
}
 0x15c   :  { %267 = dma.vmem_to_hbm [thread:$0]  %s265_s1, 128, %s443_s2, [#allocation4]  }
 0x15d   :  { %406 = dma.done.wait [#allocation4], 128  }
 0x15e   :  { %407 = vsyncadd [#allocation4], 4294967168 }
 0x15f   :  { %271 = vsyncpa [#allocation3], 1 }
 0x160   :  { %272 = vsyncpa [#allocation4], 1 }

// kernel: tpu_custom_call.1
= control target key start
LH: loop header
LB: loop body
LE: loop exit
PB: predicated region body
PF: predicated region fallthrough
CT: control target
= control target key end

     0   :  { %7 = vsyncpa [#allocation3], 0  ;;  %s441_s0 = inlined_call_operand.vmem [shape: s32[8,4], index: 0, kind: input, shape index: {}]   ;;  %s442_s1 = inlined_call_operand.hbm [shape: f32[512,128], index: 1, kind: input, shape index: {}]   ;;  %s443_s2 = inlined_call_operand.hbm [shape: f32[8,128], index: 2, kind: output, shape index: {}]  }
   0x1   :  { %8 = vsyncpa [#allocation4], 0  ;;  %s408_s9 = smov [#allocation2]  }
   0x2   :  { %s16_s10 = sshll.u32 %s408_s9, 4  ;;  %s17_s10 = int_to_ptr.vmem [resolvable:$true] %s16_s10 }
   0x3   :  { %s372_s11 = scalar_lea.vmem %s17_s10, 8192  ;;  %p377_p1 = scmp.lt.s32.totalorder %s17_s10, %s17_s10 }
   0x4   :  { %p373_p0 = scmp.ne.s32.totalorder %s17_s10, %s372_s11  ;;  %p378_p2 = scmp.lt.s32.totalorder %s372_s11, %s372_s11 }
   0x6   :  { %p379_p3 = por %p378_p2, %p377_p1 }
   0x8   :  { %p380_p4 = pnand %p379_p3, %p373_p0 }
   0xa   :  { %383 = shalt.err (!%p380_p4)
}
   0xb   :  { %s409_s12 = smov 128   ;;  %s410_s13 = smov 8  }
   0xc   :  { %22 = dma.hbm_to_vmem [thread:$0]  %s442_s1, 8192, %s17_s10, [#allocation3], %s409_s12, %s409_s12, %s410_s13  }
   0xd   :  { %404 = dma.done.wait [#allocation3], 8192  }
   0xe   :  { %405 = vsyncadd [#allocation3], 4294959104  ;;  %v411_v0 = vmov 1   ;;  %v412_v1 = vmov 0   ;;  %v26_v2 = vld [vmem:[%s441_s0] sm:$0xff]  ;;  %v84_v3 = vld [vmem:[#allocation2 + $0xf8] sm:$0xff] }
   0xf   :  { %360 = vset.pattern.permute.xlu0 %v411_v0  ;;  %362 = vset.pattern.permute.xlu1 %v412_v1  ;;  %v68_v4 = vld [vmem:[#allocation2 + $0x78] sm:$0xff]  ;;  %v83_v5 = vld [vmem:[#allocation2 + $0xf0] sm:$0xff]  ;;  %v413_v10 = vmov 3   ;;  %v414_v11 = vmov 2   ;;  %v82_v12 = vld [vmem:[#allocation2 + $0xe8] sm:$0xff]  ;;  %s416_s0 = smov [#allocation5]  }
  0x10   :  { %36 = vperm.xlu0 %360, %v26_v2   ;;  %30 = vperm.xlu1 %362, %v26_v2   ;;  %v116_v6 = vld [vmem:[#allocation2 + $0x1f8] sm:$0xff]  ;;  %v67_v8 = vld [vmem:[#allocation2 + $0x70] sm:$0xff]  ;;  %v66_v14 = vld [vmem:[#allocation2 + $0x68] sm:$0xff]  ;;  %s264_s1 = sshll.u32 %s416_s0, 4  ;;  %s265_s1 = int_to_ptr.vmem [resolvable:$true] %s264_s1 }
  0x11   :  { %281 = vmatprep.subr.mxu0 %v84_v3  ;;  %316 = vmatprep.subr.mxu1 %v116_v6  ;;  %v100_v7 = vld [vmem:[#allocation2 + $0x178] sm:$0xff]  ;;  %v115_v9 = vld [vmem:[#allocation2 + $0x1f0] sm:$0xff]  ;;  %v114_v15 = vld [vmem:[#allocation2 + $0x1e8] sm:$0xff]  ;;  %s384_s18 = scalar_lea.vmem %s265_s1, 128  ;;  %p389_p6 = scmp.lt.s32.totalorder %s265_s1, %s265_s1 }
  0x12   :  { %282 = vmatpush3.msra.mxu0 %v68_v4  ;;  %317 = vmatpush3.msra.mxu1 %v100_v7  ;;  %v99_v13 = vld [vmem:[#allocation2 + $0x170] sm:$0xff]  ;;  %v81_v16 = vld [vmem:[#allocation2 + $0xe0] sm:$0xff]  ;;  %v98_v17 = vld [vmem:[#allocation2 + $0x168] sm:$0xff]  ;;  %p385_p5 = scmp.ne.s32.totalorder %s265_s1, %s384_s18  ;;  %p390_p7 = scmp.lt.s32.totalorder %s384_s18, %s384_s18 }
  0x13   :  { %283 = vmatprep.subr.mxu0 %v83_v5  ;;  %318 = vmatprep.subr.mxu1 %v115_v9  ;;  %v65_v18 = vld [vmem:[#allocation2 + $0x60] sm:$0xff]  ;;  %v80_v20 = vld [vmem:[#allocation2 + $0xd8] sm:$0xff]  ;;  %v79_v24 = vld [vmem:[#allocation2 + $0xd0] sm:$0xff]  ;;  %v27_v5 = vlaneseq  ;;  %v415_v9 = vmov 1.0  }
  0x14   :  { %361 = vset.pattern.permute.xlu0 %v413_v10  ;;  %363 = vset.pattern.permute.xlu1 %v414_v11  ;;  %v113_v19 = vld [vmem:[#allocation2 + $0x1e0] sm:$0xff]  ;;  %v64_v22 = vld [vmem:[#allocation2 + $0x58] sm:$0xff]  ;;  %v63_v26 = vld [vmem:[#allocation2 + $0x50] sm:$0xff]  ;;  %p391_p8 = por %p390_p7, %p389_p6 }
  0x15   :  { %48 = vperm.xlu0 %361, %v26_v2   ;;  %42 = vperm.xlu1 %363, %v26_v2   ;;  %v97_v21 = vld [vmem:[#allocation2 + $0x160] sm:$0xff]  ;;  %v112_v23 = vld [vmem:[#allocation2 + $0x1d8] sm:$0xff]  ;;  %v111_v27 = vld [vmem:[#allocation2 + $0x1d0] sm:$0xff]  ;;  %v28_v6 = vand.u32 127, %v27_v5 }
  0x16   :  { %284 = vmatpush3.msra.mxu0 %v67_v8  ;;  %319 = vmatpush3.msra.mxu1 %v99_v13  ;;  %v96_v25 = vld [vmem:[#allocation2 + $0x158] sm:$0xff]  ;;  %v78_v28 = vld [vmem:[#allocation2 + $0xc8] sm:$0xff]  ;;  %v95_v29 = vld [vmem:[#allocation2 + $0x150] sm:$0xff]  ;;  %p392_p9 = pnand %p391_p8, %p385_p5 }
  0x17   :  { %285 = vmatprep.subr.mxu0 %v82_v12  ;;  %320 = vmatprep.subr.mxu1 %v114_v15  ;;  %v62_v30 = vld [vmem:[#allocation2 + $0x48] sm:$0xff]  ;;  %v77_v32 = vld [vmem:[#allocation2 + $0xc0] sm:$0xff]  ;;  %v76_v36 = vld [vmem:[#allocation2 + $0xb8] sm:$0xff] }
  0x18   :  { %286 = vmatpush3.msra.mxu0 %v66_v14  ;;  %321 = vmatpush3.msra.mxu1 %v98_v17  ;;  %v110_v31 = vld [vmem:[#allocation2 + $0x1c8] sm:$0xff]  ;;  %v61_v34 = vld [vmem:[#allocation2 + $0x40] sm:$0xff]  ;;  %v60_v38 = vld [vmem:[#allocation2 + $0x38] sm:$0xff] }
  0x19   :  { %287 = vmatprep.subr.mxu0 %v81_v16  ;;  %322 = vmatprep.subr.mxu1 %v113_v19  ;;  %v94_v33 = vld [vmem:[#allocation2 + $0x148] sm:$0xff]  ;;  %v109_v35 = vld [vmem:[#allocation2 + $0x1c0] sm:$0xff]  ;;  %v108_v39 = vld [vmem:[#allocation2 + $0x1b8] sm:$0xff] }
  0x1a   :  { %288 = vmatpush3.msra.mxu0 %v65_v18  ;;  %323 = vmatpush3.msra.mxu1 %v97_v21  ;;  %v93_v37 = vld [vmem:[#allocation2 + $0x140] sm:$0xff]  ;;  %v75_v40 = vld [vmem:[#allocation2 + $0xb0] sm:$0xff]  ;;  %v92_v41 = vld [vmem:[#allocation2 + $0x138] sm:$0xff] }
  0x1b   :  { %289 = vmatprep.subr.mxu0 %v80_v20  ;;  %324 = vmatprep.subr.mxu1 %v112_v23  ;;  %v59_v42 = vld [vmem:[#allocation2 + $0x30] sm:$0xff]  ;;  %v74_v44 = vld [vmem:[#allocation2 + $0xa8] sm:$0xff]  ;;  %v73_v48 = vld [vmem:[#allocation2 + $0xa0] sm:$0xff] }
  0x1c   :  { %290 = vmatpush3.msra.mxu0 %v64_v22  ;;  %325 = vmatpush3.msra.mxu1 %v96_v25  ;;  %v107_v43 = vld [vmem:[#allocation2 + $0x1b0] sm:$0xff]  ;;  %v58_v46 = vld [vmem:[#allocation2 + $0x28] sm:$0xff]  ;;  %v57_v50 = vld [vmem:[#allocation2 + $0x20] sm:$0xff] }
  0x1d   :  { %291 = vmatprep.subr.mxu0 %v79_v24  ;;  %326 = vmatprep.subr.mxu1 %v111_v27  ;;  %v91_v45 = vld [vmem:[#allocation2 + $0x130] sm:$0xff]  ;;  %v106_v47 = vld [vmem:[#allocation2 + $0x1a8] sm:$0xff]  ;;  %v105_v51 = vld [vmem:[#allocation2 + $0x1a0] sm:$0xff] }
  0x1e   :  { %292 = vmatpush3.msra.mxu0 %v63_v26  ;;  %327 = vmatpush3.msra.mxu1 %v95_v29  ;;  %v90_v49 = vld [vmem:[#allocation2 + $0x128] sm:$0xff]  ;;  %v72_v52 = vld [vmem:[#allocation2 + $0x98] sm:$0xff]  ;;  %v89_v53 = vld [vmem:[#allocation2 + $0x120] sm:$0xff] }
  0x1f   :  { %293 = vmatprep.subr.mxu0 %v78_v28  ;;  %328 = vmatprep.subr.mxu1 %v110_v31  ;;  %v56_v54 = vld [vmem:[#allocation2 + $0x18] sm:$0xff]  ;;  %v71_v56 = vld [vmem:[#allocation2 + $0x90] sm:$0xff]  ;;  %v70_v60 = vld [vmem:[#allocation2 + $0x88] sm:$0xff] }
  0x20   :  { %294 = vmatpush3.msra.mxu0 %v62_v30  ;;  %329 = vmatpush3.msra.mxu1 %v94_v33  ;;  %v104_v55 = vld [vmem:[#allocation2 + $0x198] sm:$0xff]  ;;  %v55_v58 = vld [vmem:[#allocation2 + $0x10] sm:$0xff]  ;;  %v54_v62 = vld [vmem:[#allocation2 + $0x8] sm:$0xff] }
  0x21   :  { %295 = vmatprep.subr.mxu0 %v77_v32  ;;  %330 = vmatprep.subr.mxu1 %v109_v35  ;;  %v88_v57 = vld [vmem:[#allocation2 + $0x118] sm:$0xff]  ;;  %v103_v59 = vld [vmem:[#allocation2 + $0x190] sm:$0xff]  ;;  %v102_v63 = vld [vmem:[#allocation2 + $0x188] sm:$0xff] }
  0x22   :  { %296 = vmatpush3.msra.mxu0 %v61_v34  ;;  %331 = vmatpush3.msra.mxu1 %v93_v37  ;;  %v87_v61 = vld [vmem:[#allocation2 + $0x110] sm:$0xff]  ;;  %v69_v0 = vld [vmem:[#allocation2 + $0x80] sm:$0xff]  ;;  %v86_v1 = vld [vmem:[#allocation2 + $0x108] sm:$0xff] }
  0x23   :  { %297 = vmatprep.subr.mxu0 %v76_v36  ;;  %332 = vmatprep.subr.mxu1 %v108_v39  ;;  %v53_v2 = vld [vmem:[#allocation2] sm:$0xff] }
  0x24   :  { %298 = vmatpush3.msra.mxu0 %v60_v38  ;;  %333 = vmatpush3.msra.mxu1 %v92_v41  ;;  %v101_v3 = vld [vmem:[#allocation2 + $0x180] sm:$0xff] }
  0x25   :  { %299 = vmatprep.subr.mxu0 %v75_v40  ;;  %334 = vmatprep.subr.mxu1 %v107_v43  ;;  %v85_v4 = vld [vmem:[#allocation2 + $0x100] sm:$0xff] }
  0x26   :  { %300 = vmatpush3.msra.mxu0 %v59_v42  ;;  %335 = vmatpush3.msra.mxu1 %v91_v45 }
  0x27   :  { %301 = vmatprep.subr.mxu0 %v74_v44  ;;  %336 = vmatprep.subr.mxu1 %v106_v47 }
  0x28   :  { %302 = vmatpush3.msra.mxu0 %v58_v46  ;;  %337 = vmatpush3.msra.mxu1 %v90_v49 }
  0x29   :  { %303 = vmatprep.subr.mxu0 %v73_v48  ;;  %338 = vmatprep.subr.mxu1 %v105_v51 }
  0x2a   :  { %304 = vmatpush3.msra.mxu0 %v57_v50  ;;  %339 = vmatpush3.msra.mxu1 %v89_v53 }
  0x2b   :  { %305 = vmatprep.subr.mxu0 %v72_v52  ;;  %340 = vmatprep.subr.mxu1 %v104_v55 }
  0x2c   :  { %306 = vmatpush3.msra.mxu0 %v56_v54  ;;  %341 = vmatpush3.msra.mxu1 %v88_v57 }
  0x2d   :  { %307 = vmatprep.subr.mxu0 %v71_v56  ;;  %342 = vmatprep.subr.mxu1 %v103_v59 }
  0x2e   :  { %308 = vmatpush3.msra.mxu0 %v55_v58  ;;  %343 = vmatpush3.msra.mxu1 %v87_v61 }
  0x2f   :  { %309 = vmatprep.subr.mxu0 %v70_v60  ;;  %344 = vmatprep.subr.mxu1 %v102_v63 }
  0x30   :  { %310 = vmatpush3.msra.mxu0 %v54_v62  ;;  %345 = vmatpush3.msra.mxu1 %v86_v1 }
  0x31   :  { %311 = vmatprep.subr.mxu0 %v69_v0  ;;  %346 = vmatprep.subr.mxu1 %v101_v3 }
  0x32   :  { %312 = vmatpush3.msra.mxu0 %v53_v2  ;;  %347 = vmatpush3.msra.mxu1 %v85_v4 }
  0x8b   :  { %v37_v7 = vpop.permute.xlu0 %36  ;;  %v31_v8 = vpop.permute.xlu1 %30 }
  0x8c   :  { %vm32_vm0 = vcmp.eq.s32.totalorder %v28_v6, %v31_v8  ;;  %vm38_vm1 = vcmp.eq.s32.totalorder %v28_v6, %v37_v7 }
  0x8d   :  { %277 = vmatprep.mubr.msk.f32.mxu0 %vm38_vm1, %v415_v9 }
  0x8e   :  { %278 = vmatmul.mubr.msk.f32.vlgmr.msra.gmra.mxu0 %vm32_vm0, %v415_v9 }
  0x90   :  { %v49_v10 = vpop.permute.xlu0 %48  ;;  %v43_v11 = vpop.permute.xlu1 %42 }
  0x91   :  { %vm44_vm2 = vcmp.eq.s32.totalorder %v28_v6, %v43_v11  ;;  %vm50_vm3 = vcmp.eq.s32.totalorder %v28_v6, %v49_v10 }
  0x92   :  { %279 = vmatprep.mubr.msk.f32.mxu1 %vm50_vm3, %v415_v9 }
  0x93   :  { %280 = vmatmul.mubr.msk.f32.vlgmr.msra.gmra.mxu1 %vm44_vm2, %v415_v9 }
 0x14e   :  { %v313_v12 = vpop.f32.mrf.mxu0 }
 0x150   :  { %v314_v13 = vpop.f32.mrf.mxu0 }
 0x151   :  { %v315_v16 = vadd.f32 %v314_v13, %v313_v12 }
 0x153   :  { %v348_v14 = vpop.f32.mrf.mxu1 }
 0x155   :  { %v349_v15 = vpop.f32.mrf.mxu1 }
 0x156   :  { %v350_v17 = vadd.f32 %v349_v15, %v348_v14 }
 0x158   :  { %v254_v18 = vadd.f32 %v350_v17, %v315_v16 }
 0x15a   :  { %257 = vst [vmem:[#allocation5] sm:$0xff] %v254_v18 }
 0x15b   :  { %395 = shalt.err (!%p392_p9)
}
 0x15c   :  { %267 = dma.vmem_to_hbm [thread:$0]  %s265_s1, 128, %s443_s2, [#allocation4]  }
 0x15d   :  { %406 = dma.done.wait [#allocation4], 128  }
 0x15e   :  { %407 = vsyncadd [#allocation4], 4294967168 }
 0x15f   :  { %271 = vsyncpa [#allocation3], 1 }
 0x160   :  { %272 = vsyncpa [#allocation4], 1 }

</bundles_post_ra>
